<compile_context>
chip_gen: v5e
topology: v5e:2x2
jax: 0.10.0
libtpu: 0.0.40
codegen_flags: <defaults>
</compile_context>

<pallas_src>
import functools

import jax
import jax.numpy as jnp
from jax.experimental import pallas as pl
from jax.experimental.pallas import tpu as pltpu

SELU_ALPHA = 1.6732632423543772848170429916717
SELU_SCALE = 1.0507009873554804934193349852946


def _selu(h):
    return SELU_SCALE * jnp.where(h > 0, h, SELU_ALPHA * (jnp.exp(h) - 1.0))


def _seq_embed_kernel(x_ref, w_ref, b_ref, o_ref, *, conv_kernel, out_len, t_ch):
    # x_ref: (tb, L, A)       f32  raw sequences (one-hot-ish features)
    # w_ref: (K, A, C_PAD)    bf16 conv weight, tap-major
    # b_ref: (1, C_PAD)       f32  conv bias
    # o_ref: (1, tb, C_PAD)   f32  max-pooled embeddings (lane-dense store)
    tb, _, a = x_ref.shape
    c_pad = w_ref.shape[2]

    # Chunked running max over conv-output positions: bounds the f32 intermediate
    # to (tb*t_ch, C_PAD).  Clamped starts make the last chunk overlap; overlapping
    # positions are max-invariant.
    n_chunks = pl.cdiv(out_len, t_ch)
    starts = sorted({min(c * t_ch, out_len - t_ch) for c in range(n_chunks)})

    pooled = None
    for start in starts:
        acc = jnp.zeros((tb * t_ch, c_pad), jnp.float32)
        for k in range(conv_kernel):
            # Conv tap k for this chunk of output positions: one 2-D MXU matmul.
            xk = x_ref[:, start + k:start + k + t_ch, :].astype(jnp.bfloat16)
            acc = acc + jnp.dot(xk.reshape(tb * t_ch, a), w_ref[k],
                                preferred_element_type=jnp.float32)
        cmax = jnp.max(acc.reshape(tb, t_ch, c_pad), axis=1)      # (tb, C_PAD)
        pooled = cmax if pooled is None else jnp.maximum(pooled, cmax)

    # Bias and SELU commute with the positional max (bias is per-channel constant,
    # SELU is strictly increasing), so apply them once on the pooled result.
    h = pooled + b_ref[...]
    o_ref[...] = _selu(h)[None, :, :].astype(o_ref.dtype)


def seq_embed_forward(seqs, conv_w, conv_b, *, conv_kernel, tb=None):
    """seqs: (N, M, L, A) f32.  conv_w: (C, A, K) PyTorch Conv1d layout.  conv_b: (C,)."""
    N, M, L, A = seqs.shape
    C = conv_w.shape[0]
    K = conv_kernel
    out_len = L - K + 1                       # hidden_size
    assert out_len >= 1, "num_length must be >= conv_kernel"
    B = N * M
    C_PAD = 128 * pl.cdiv(C, 128)             # lane-dense output channels
    A_LANES = 128 * pl.cdiv(A, 128)           # VMEM lane padding of the feature dim

    # Chunk of conv-output positions per inner step (sublane-aligned when possible).
    t_ch = min(out_len, 128)
    if out_len >= 8:
        t_ch = (t_ch // 8) * 8

    if tb is None:
        # ~2 MiB lane-padded f32 input block per buffer AND >= ~8 grid steps, so
        # double-buffered DMA stays hidden and v7x's two TensorCores split the grid;
        # fits v5e's 16 MiB scoped default and v7x's 64 MiB physical with headroom.
        blk_budget = 2 << 20
        tb_target = max(1, min(blk_budget // (L * A_LANES * 4), max(1, B // 8), B))
        tb = 1
        for d in range(1, tb_target + 1):     # largest divisor of B <= target: no batch pad
            if B % d == 0:
                tb = d
    assert B % tb == 0 and tb >= 1
    n_steps = B // tb
    grid = (n_steps,)

    # ---- wrapper-side layout plumbing only (no HBM-expanding compute) ----
    x = seqs.reshape(B, L, A)                                  # free; kernel reads f32 directly
    w = jnp.transpose(conv_w, (2, 1, 0))                       # (K, A, C): x[..., a] @ w[k, a, c]
    w = jnp.pad(w, ((0, 0), (0, 0), (0, C_PAD - C))).astype(jnp.bfloat16)
    b = jnp.pad(conv_b.reshape(1, C), ((0, 0), (0, C_PAD - C))).astype(jnp.float32)

    kernel = functools.partial(_seq_embed_kernel, conv_kernel=K, out_len=out_len,
                               t_ch=t_ch)

    n_chunks = pl.cdiv(out_len, t_ch)
    cost = pl.CostEstimate(
        flops=2 * B * n_chunks * t_ch * K * A * C_PAD,
        transcendentals=B * C_PAD,
        bytes_accessed=x.size * 4 + w.size * 2 + b.size * 4 + B * C_PAD * 4,
    )

    out = pl.pallas_call(
        kernel,
        out_shape=jax.ShapeDtypeStruct((n_steps, tb, C_PAD), jnp.float32),
        grid_spec=pltpu.PrefetchScalarGridSpec(
            num_scalar_prefetch=0,
            grid=grid,
            in_specs=[
                pl.BlockSpec((tb, L, A), lambda i: (i, 0, 0)),       # raw sequences
                pl.BlockSpec((K, A, C_PAD), lambda i: (0, 0, 0)),    # resident weight
                pl.BlockSpec((1, C_PAD), lambda i: (0, 0)),          # resident bias
            ],
            out_specs=pl.BlockSpec((1, tb, C_PAD), lambda i: (i, 0, 0)),
        ),
        compiler_params=pltpu.CompilerParams(
            dimension_semantics=("parallel",),
            vmem_limit_bytes=32 * 1024 * 1024,
        ),
        cost_estimate=cost,
    )(x, w, b)

    embed = out.reshape(B, C_PAD)[:, :C].astype(seqs.dtype)
    return embed.reshape(N, M, C)


def _reference(seqs, conv_w, conv_b, conv_kernel, operand_dtype=jnp.float32):
    """Plain-JAX mirror of the PyTorch forward (optionally with bf16 matmul operands)."""
    N, M, L, A = seqs.shape
    C = conv_w.shape[0]
    out_len = L - conv_kernel + 1
    x = seqs.reshape(N * M, L, A).astype(operand_dtype).astype(jnp.float32)
    w = conv_w.astype(operand_dtype).astype(jnp.float32)
    b = conv_b.astype(jnp.float32)            # kernel keeps the bias in f32
    acc = jnp.zeros((N * M, out_len, C), jnp.float32)
    for k in range(conv_kernel):
        acc = acc + jnp.einsum('bta,ca->btc', x[:, k:k + out_len, :], w[:, :, k],
                               precision=jax.lax.Precision.HIGHEST)
    h = _selu(acc + b[None, None, :])
    return jnp.max(h, axis=1).reshape(N, M, C)


if __name__ == "__main__":
    # Small shapes consistent with the module defaults.
    N, M = 2, 4                 # batch of sequence-sets
    L = 16                      # num_length
    A = 21                      # len(alphabet)  (pos_encode=False -> input_feats = A)
    C = 32                      # channels
    K = 5                       # conv_kernel

    key = jax.random.PRNGKey(0)
    k_seq, k_w, k_b = jax.random.split(key, 3)

    seqs = jax.random.uniform(k_seq, (N, M, L, A), dtype=jnp.float32)

    # Parameter init matching the module's scheme:
    # weight ~ N(0, sqrt(1/prod(shape))) ; bias ~ U(-sqrt(1/(A*K)), +sqrt(1/(A*K)))
    w_std = (1.0 / (C * A * K)) ** 0.5
    conv_w = w_std * jax.random.normal(k_w, (C, A, K), dtype=jnp.float32)
    b_bound = (1.0 / (A * K)) ** 0.5
    conv_b = jax.random.uniform(k_b, (C,), minval=-b_bound, maxval=b_bound,
                                dtype=jnp.float32)

    out = seq_embed_forward(seqs, conv_w, conv_b, conv_kernel=K)
    out = jax.block_until_ready(out)
    assert out.shape == (N, M, C), out.shape

    # Tight check vs a reference using the same bf16 matmul operands / f32 accumulation.
    ref_q = _reference(seqs, conv_w, conv_b, K, operand_dtype=jnp.bfloat16)
    err_q = float(jnp.max(jnp.abs(out - ref_q)))
    assert jnp.allclose(out, ref_q, atol=1e-4, rtol=1e-4), err_q

    # Sanity check vs the pure-f32 reference (only bf16 operand rounding remains).
    ref_f = _reference(seqs, conv_w, conv_b, K, operand_dtype=jnp.float32)
    err_f = float(jnp.max(jnp.abs(out - ref_f)))
    assert jnp.allclose(out, ref_f, atol=1e-2, rtol=1e-2), err_f

    print("KERNEL_OK")
</pallas_src>

<mosaic_0001>
module attributes {stable_mosaic.version = 11 : i64} {
  func.func @_seq_embed_kernel(%arg0: i32, %arg1: memref<1x16x21xf32, #tpu.memory_space<vmem>>, %arg2: memref<5x21x128xbf16, #tpu.memory_space<vmem>>, %arg3: memref<1x128xf32, #tpu.memory_space<vmem>>, %arg4: memref<1x1x128xf32, #tpu.memory_space<vmem>>) attributes {dimension_semantics = [#tpu.dimension_semantics<parallel>], iteration_bounds = array<i64: 8>, scalar_prefetch = 0 : i64, scratch_operands = 0 : i64, tpu.core_type = #tpu.core_type<tc>, window_params = [{transform_indices = @transform_0, window_bounds = array<i64: 1, 16, 21>}, {pipeline_mode = #tpu.pipeline_mode<synchronous>, transform_indices = @transform_1, window_bounds = array<i64: 5, 21, 128>}, {pipeline_mode = #tpu.pipeline_mode<synchronous>, transform_indices = @transform_2, window_bounds = array<i64: 1, 128>}, {transform_indices = @transform_3, window_bounds = array<i64: 1, 1, 128>}]} {
    %cst = arith.constant 0.000000e+00 : f32
    %0 = vector.broadcast %cst : f32 to vector<8x128xf32>
    %c0 = arith.constant 0 : index
    %c0_0 = arith.constant 0 : index
    %c0_1 = arith.constant 0 : index
    %1 = vector.load %arg1[%c0, %c0_0, %c0_1] : memref<1x16x21xf32, #tpu.memory_space<vmem>>, vector<1x8x21xf32>
    %2 = arith.truncf %1 : vector<1x8x21xf32> to vector<1x8x21xbf16>
    %3 = vector.shape_cast %2 : vector<1x8x21xbf16> to vector<8x21xbf16>
    %c0_2 = arith.constant 0 : index
    %c0_3 = arith.constant 0 : index
    %c0_4 = arith.constant 0 : index
    %4 = vector.load %arg2[%c0_2, %c0_3, %c0_4] : memref<5x21x128xbf16, #tpu.memory_space<vmem>>, vector<1x21x128xbf16>
    %5 = vector.shape_cast %4 : vector<1x21x128xbf16> to vector<21x128xbf16>
    %cst_5 = arith.constant dense<0.000000e+00> : vector<8x128xf32>
    %6 = tpu.matmul %3, %5, %cst_5 {dimension_numbers = #tpu.dot_dimension_numbers<[1], [0], [0], [1], [0, 0, 1, 1], [], []>} : vector<8x21xbf16>, vector<21x128xbf16>, vector<8x128xf32> -> vector<8x128xf32>
    %7 = arith.addf %0, %6 : vector<8x128xf32>
    %c0_6 = arith.constant 0 : index
    %c1 = arith.constant 1 : index
    %c0_7 = arith.constant 0 : index
    %8 = vector.load %arg1[%c0_6, %c1, %c0_7] : memref<1x16x21xf32, #tpu.memory_space<vmem>>, vector<1x8x21xf32>
    %9 = arith.truncf %8 : vector<1x8x21xf32> to vector<1x8x21xbf16>
    %10 = vector.shape_cast %9 : vector<1x8x21xbf16> to vector<8x21xbf16>
    %c1_8 = arith.constant 1 : index
    %c0_9 = arith.constant 0 : index
    %c0_10 = arith.constant 0 : index
    %11 = vector.load %arg2[%c1_8, %c0_9, %c0_10] : memref<5x21x128xbf16, #tpu.memory_space<vmem>>, vector<1x21x128xbf16>
    %12 = vector.shape_cast %11 : vector<1x21x128xbf16> to vector<21x128xbf16>
    %cst_11 = arith.constant dense<0.000000e+00> : vector<8x128xf32>
    %13 = tpu.matmul %10, %12, %cst_11 {dimension_numbers = #tpu.dot_dimension_numbers<[1], [0], [0], [1], [0, 0, 1, 1], [], []>} : vector<8x21xbf16>, vector<21x128xbf16>, vector<8x128xf32> -> vector<8x128xf32>
    %14 = arith.addf %7, %13 : vector<8x128xf32>
    %c0_12 = arith.constant 0 : index
    %c2 = arith.constant 2 : index
    %c0_13 = arith.constant 0 : index
    %15 = vector.load %arg1[%c0_12, %c2, %c0_13] : memref<1x16x21xf32, #tpu.memory_space<vmem>>, vector<1x8x21xf32>
    %16 = arith.truncf %15 : vector<1x8x21xf32> to vector<1x8x21xbf16>
    %17 = vector.shape_cast %16 : vector<1x8x21xbf16> to vector<8x21xbf16>
    %c2_14 = arith.constant 2 : index
    %c0_15 = arith.constant 0 : index
    %c0_16 = arith.constant 0 : index
    %18 = vector.load %arg2[%c2_14, %c0_15, %c0_16] : memref<5x21x128xbf16, #tpu.memory_space<vmem>>, vector<1x21x128xbf16>
    %19 = vector.shape_cast %18 : vector<1x21x128xbf16> to vector<21x128xbf16>
    %cst_17 = arith.constant dense<0.000000e+00> : vector<8x128xf32>
    %20 = tpu.matmul %17, %19, %cst_17 {dimension_numbers = #tpu.dot_dimension_numbers<[1], [0], [0], [1], [0, 0, 1, 1], [], []>} : vector<8x21xbf16>, vector<21x128xbf16>, vector<8x128xf32> -> vector<8x128xf32>
    %21 = arith.addf %14, %20 : vector<8x128xf32>
    %c0_18 = arith.constant 0 : index
    %c3 = arith.constant 3 : index
    %c0_19 = arith.constant 0 : index
    %22 = vector.load %arg1[%c0_18, %c3, %c0_19] : memref<1x16x21xf32, #tpu.memory_space<vmem>>, vector<1x8x21xf32>
    %23 = arith.truncf %22 : vector<1x8x21xf32> to vector<1x8x21xbf16>
    %24 = vector.shape_cast %23 : vector<1x8x21xbf16> to vector<8x21xbf16>
    %c3_20 = arith.constant 3 : index
    %c0_21 = arith.constant 0 : index
    %c0_22 = arith.constant 0 : index
    %25 = vector.load %arg2[%c3_20, %c0_21, %c0_22] : memref<5x21x128xbf16, #tpu.memory_space<vmem>>, vector<1x21x128xbf16>
    %26 = vector.shape_cast %25 : vector<1x21x128xbf16> to vector<21x128xbf16>
    %cst_23 = arith.constant dense<0.000000e+00> : vector<8x128xf32>
    %27 = tpu.matmul %24, %26, %cst_23 {dimension_numbers = #tpu.dot_dimension_numbers<[1], [0], [0], [1], [0, 0, 1, 1], [], []>} : vector<8x21xbf16>, vector<21x128xbf16>, vector<8x128xf32> -> vector<8x128xf32>
    %28 = arith.addf %21, %27 : vector<8x128xf32>
    %c0_24 = arith.constant 0 : index
    %c4 = arith.constant 4 : index
    %c0_25 = arith.constant 0 : index
    %29 = vector.load %arg1[%c0_24, %c4, %c0_25] : memref<1x16x21xf32, #tpu.memory_space<vmem>>, vector<1x8x21xf32>
    %30 = arith.truncf %29 : vector<1x8x21xf32> to vector<1x8x21xbf16>
    %31 = vector.shape_cast %30 : vector<1x8x21xbf16> to vector<8x21xbf16>
    %c4_26 = arith.constant 4 : index
    %c0_27 = arith.constant 0 : index
    %c0_28 = arith.constant 0 : index
    %32 = vector.load %arg2[%c4_26, %c0_27, %c0_28] : memref<5x21x128xbf16, #tpu.memory_space<vmem>>, vector<1x21x128xbf16>
    %33 = vector.shape_cast %32 : vector<1x21x128xbf16> to vector<21x128xbf16>
    %cst_29 = arith.constant dense<0.000000e+00> : vector<8x128xf32>
    %34 = tpu.matmul %31, %33, %cst_29 {dimension_numbers = #tpu.dot_dimension_numbers<[1], [0], [0], [1], [0, 0, 1, 1], [], []>} : vector<8x21xbf16>, vector<21x128xbf16>, vector<8x128xf32> -> vector<8x128xf32>
    %35 = arith.addf %28, %34 : vector<8x128xf32>
    %36 = vector.shape_cast %35 : vector<8x128xf32> to vector<1x8x128xf32>
    %cst_30 = arith.constant dense<0xFF800000> : vector<1x128xf32>
    %37 = vector.multi_reduction <maximumf>, %36, %cst_30 [1] : vector<1x8x128xf32> to vector<1x128xf32>
    %cst_31 = arith.constant 0.000000e+00 : f32
    %38 = vector.broadcast %cst_31 : f32 to vector<8x128xf32>
    %c0_32 = arith.constant 0 : index
    %c4_33 = arith.constant 4 : index
    %c0_34 = arith.constant 0 : index
    %39 = vector.load %arg1[%c0_32, %c4_33, %c0_34] : memref<1x16x21xf32, #tpu.memory_space<vmem>>, vector<1x8x21xf32>
    %40 = arith.truncf %39 : vector<1x8x21xf32> to vector<1x8x21xbf16>
    %41 = vector.shape_cast %40 : vector<1x8x21xbf16> to vector<8x21xbf16>
    %c0_35 = arith.constant 0 : index
    %c0_36 = arith.constant 0 : index
    %c0_37 = arith.constant 0 : index
    %42 = vector.load %arg2[%c0_35, %c0_36, %c0_37] : memref<5x21x128xbf16, #tpu.memory_space<vmem>>, vector<1x21x128xbf16>
    %43 = vector.shape_cast %42 : vector<1x21x128xbf16> to vector<21x128xbf16>
    %cst_38 = arith.constant dense<0.000000e+00> : vector<8x128xf32>
    %44 = tpu.matmul %41, %43, %cst_38 {dimension_numbers = #tpu.dot_dimension_numbers<[1], [0], [0], [1], [0, 0, 1, 1], [], []>} : vector<8x21xbf16>, vector<21x128xbf16>, vector<8x128xf32> -> vector<8x128xf32>
    %45 = arith.addf %38, %44 : vector<8x128xf32>
    %c0_39 = arith.constant 0 : index
    %c5 = arith.constant 5 : index
    %c0_40 = arith.constant 0 : index
    %46 = vector.load %arg1[%c0_39, %c5, %c0_40] : memref<1x16x21xf32, #tpu.memory_space<vmem>>, vector<1x8x21xf32>
    %47 = arith.truncf %46 : vector<1x8x21xf32> to vector<1x8x21xbf16>
    %48 = vector.shape_cast %47 : vector<1x8x21xbf16> to vector<8x21xbf16>
    %c1_41 = arith.constant 1 : index
    %c0_42 = arith.constant 0 : index
    %c0_43 = arith.constant 0 : index
    %49 = vector.load %arg2[%c1_41, %c0_42, %c0_43] : memref<5x21x128xbf16, #tpu.memory_space<vmem>>, vector<1x21x128xbf16>
    %50 = vector.shape_cast %49 : vector<1x21x128xbf16> to vector<21x128xbf16>
    %cst_44 = arith.constant dense<0.000000e+00> : vector<8x128xf32>
    %51 = tpu.matmul %48, %50, %cst_44 {dimension_numbers = #tpu.dot_dimension_numbers<[1], [0], [0], [1], [0, 0, 1, 1], [], []>} : vector<8x21xbf16>, vector<21x128xbf16>, vector<8x128xf32> -> vector<8x128xf32>
    %52 = arith.addf %45, %51 : vector<8x128xf32>
    %c0_45 = arith.constant 0 : index
    %c6 = arith.constant 6 : index
    %c0_46 = arith.constant 0 : index
    %53 = vector.load %arg1[%c0_45, %c6, %c0_46] : memref<1x16x21xf32, #tpu.memory_space<vmem>>, vector<1x8x21xf32>
    %54 = arith.truncf %53 : vector<1x8x21xf32> to vector<1x8x21xbf16>
    %55 = vector.shape_cast %54 : vector<1x8x21xbf16> to vector<8x21xbf16>
    %c2_47 = arith.constant 2 : index
    %c0_48 = arith.constant 0 : index
    %c0_49 = arith.constant 0 : index
    %56 = vector.load %arg2[%c2_47, %c0_48, %c0_49] : memref<5x21x128xbf16, #tpu.memory_space<vmem>>, vector<1x21x128xbf16>
    %57 = vector.shape_cast %56 : vector<1x21x128xbf16> to vector<21x128xbf16>
    %cst_50 = arith.constant dense<0.000000e+00> : vector<8x128xf32>
    %58 = tpu.matmul %55, %57, %cst_50 {dimension_numbers = #tpu.dot_dimension_numbers<[1], [0], [0], [1], [0, 0, 1, 1], [], []>} : vector<8x21xbf16>, vector<21x128xbf16>, vector<8x128xf32> -> vector<8x128xf32>
    %59 = arith.addf %52, %58 : vector<8x128xf32>
    %c0_51 = arith.constant 0 : index
    %c7 = arith.constant 7 : index
    %c0_52 = arith.constant 0 : index
    %60 = vector.load %arg1[%c0_51, %c7, %c0_52] : memref<1x16x21xf32, #tpu.memory_space<vmem>>, vector<1x8x21xf32>
    %61 = arith.truncf %60 : vector<1x8x21xf32> to vector<1x8x21xbf16>
    %62 = vector.shape_cast %61 : vector<1x8x21xbf16> to vector<8x21xbf16>
    %c3_53 = arith.constant 3 : index
    %c0_54 = arith.constant 0 : index
    %c0_55 = arith.constant 0 : index
    %63 = vector.load %arg2[%c3_53, %c0_54, %c0_55] : memref<5x21x128xbf16, #tpu.memory_space<vmem>>, vector<1x21x128xbf16>
    %64 = vector.shape_cast %63 : vector<1x21x128xbf16> to vector<21x128xbf16>
    %cst_56 = arith.constant dense<0.000000e+00> : vector<8x128xf32>
    %65 = tpu.matmul %62, %64, %cst_56 {dimension_numbers = #tpu.dot_dimension_numbers<[1], [0], [0], [1], [0, 0, 1, 1], [], []>} : vector<8x21xbf16>, vector<21x128xbf16>, vector<8x128xf32> -> vector<8x128xf32>
    %66 = arith.addf %59, %65 : vector<8x128xf32>
    %c0_57 = arith.constant 0 : index
    %c8 = arith.constant 8 : index
    %c0_58 = arith.constant 0 : index
    %67 = vector.load %arg1[%c0_57, %c8, %c0_58] : memref<1x16x21xf32, #tpu.memory_space<vmem>>, vector<1x8x21xf32>
    %68 = arith.truncf %67 : vector<1x8x21xf32> to vector<1x8x21xbf16>
    %69 = vector.shape_cast %68 : vector<1x8x21xbf16> to vector<8x21xbf16>
    %c4_59 = arith.constant 4 : index
    %c0_60 = arith.constant 0 : index
    %c0_61 = arith.constant 0 : index
    %70 = vector.load %arg2[%c4_59, %c0_60, %c0_61] : memref<5x21x128xbf16, #tpu.memory_space<vmem>>, vector<1x21x128xbf16>
    %71 = vector.shape_cast %70 : vector<1x21x128xbf16> to vector<21x128xbf16>
    %cst_62 = arith.constant dense<0.000000e+00> : vector<8x128xf32>
    %72 = tpu.matmul %69, %71, %cst_62 {dimension_numbers = #tpu.dot_dimension_numbers<[1], [0], [0], [1], [0, 0, 1, 1], [], []>} : vector<8x21xbf16>, vector<21x128xbf16>, vector<8x128xf32> -> vector<8x128xf32>
    %73 = arith.addf %66, %72 : vector<8x128xf32>
    %74 = vector.shape_cast %73 : vector<8x128xf32> to vector<1x8x128xf32>
    %cst_63 = arith.constant dense<0xFF800000> : vector<1x128xf32>
    %75 = vector.multi_reduction <maximumf>, %74, %cst_63 [1] : vector<1x8x128xf32> to vector<1x128xf32>
    %76 = arith.maximumf %37, %75 : vector<1x128xf32>
    %c0_64 = arith.constant 0 : index
    %c0_65 = arith.constant 0 : index
    %77 = vector.load %arg3[%c0_64, %c0_65] : memref<1x128xf32, #tpu.memory_space<vmem>>, vector<1x128xf32>
    %78 = arith.addf %76, %77 : vector<1x128xf32>
    %cst_66 = arith.constant 0.000000e+00 : f32
    %79 = vector.broadcast %cst_66 : f32 to vector<1x128xf32>
    %80 = arith.cmpf ogt, %78, %79 : vector<1x128xf32>
    %81 = math.exp %78 : vector<1x128xf32>
    %cst_67 = arith.constant 1.000000e+00 : f32
    %82 = vector.broadcast %cst_67 : f32 to vector<1x128xf32>
    %83 = arith.subf %81, %82 : vector<1x128xf32>
    %cst_68 = arith.constant 1.67326319 : f32
    %84 = vector.broadcast %cst_68 : f32 to vector<1x128xf32>
    %85 = arith.mulf %84, %83 : vector<1x128xf32>
    %86 = arith.select %80, %78, %85 : vector<1x128xi1>, vector<1x128xf32>
    %cst_69 = arith.constant 1.05070102 : f32
    %87 = vector.broadcast %cst_69 : f32 to vector<1x128xf32>
    %88 = arith.mulf %87, %86 : vector<1x128xf32>
    %89 = vector.shape_cast %88 : vector<1x128xf32> to vector<1x1x128xf32>
    %c0_70 = arith.constant 0 : index
    %c0_71 = arith.constant 0 : index
    %c0_72 = arith.constant 0 : index
    %90 = vector.load %arg4[%c0_70, %c0_71, %c0_72] : memref<1x1x128xf32, #tpu.memory_space<vmem>>, vector<1x1x128xf32>
    tpu.vector_store %arg4[%c0_70, %c0_71, %c0_72], %89 {strides = array<i32>} : memref<1x1x128xf32, #tpu.memory_space<vmem>>, vector<1x1x128xf32>,
    return
  }
  func.func @transform_0(%arg0: i32) -> (i32, i32, i32) {
    %c0_i32 = arith.constant 0 : i32
    %c0_i32_0 = arith.constant 0 : i32
    %c0_i32_1 = arith.constant 0 : i32
    return %arg0, %c0_i32, %c0_i32_0 : i32, i32, i32
  }
  func.func @transform_1(%arg0: i32) -> (i32, i32, i32) {
    %c0_i32 = arith.constant 0 : i32
    %c0_i32_0 = arith.constant 0 : i32
    %c0_i32_1 = arith.constant 0 : i32
    %c0_i32_2 = arith.constant 0 : i32
    return %c0_i32, %c0_i32_0, %c0_i32_1 : i32, i32, i32
  }
  func.func @transform_2(%arg0: i32) -> (i32, i32) {
    %c0_i32 = arith.constant 0 : i32
    %c0_i32_0 = arith.constant 0 : i32
    %c0_i32_1 = arith.constant 0 : i32
    return %c0_i32, %c0_i32_0 : i32, i32
  }
  func.func @transform_3(%arg0: i32) -> (i32, i32, i32) {
    %c0_i32 = arith.constant 0 : i32
    %c0_i32_0 = arith.constant 0 : i32
    %c0_i32_1 = arith.constant 0 : i32
    return %arg0, %c0_i32, %c0_i32_0 : i32, i32, i32
  }
}

</mosaic_0001>

<bundles_post_ra>
// kernel: tpu_custom_call.1
= control target key start
LH: loop header
LB: loop body
LE: loop exit
PB: predicated region body
PF: predicated region fallthrough
CT: control target
= control target key end

     0   :  { %8 = vsyncpa [#allocation3], 0  ;;  %s1019_s0 = inlined_call_operand.hbm [shape: f32[8,16,21], index: 0, kind: input, shape index: {}]   ;;  %s1020_s1 = inlined_call_operand.hbm [shape: bf16[5,21,128], index: 1, kind: input, shape index: {}]   ;;  %s1021_s2 = inlined_call_operand.vmem [shape: f32[1,128], index: 2, kind: input, shape index: {}]   ;;  %s1022_s3 = inlined_call_operand.hbm [shape: f32[8,1,128], index: 3, kind: output, shape index: {}]  }
   0x1   :  { %10 = vsyncpa [#allocation3 + $0x1], 0 }
   0x2   :  { %11 = vsyncpa [#allocation6], 0 }
   0x3   :  { %12 = vsyncpa [#allocation4], 0 }
   0x4   :  { %14 = vsyncpa [#allocation4 + $0x1], 0  ;;  %s856_s12 = smov 0   ;;  %s858_s13 = smov 0  }
   0x5   :  { %s860_s14 = smov 0   ;;  %s862_s15 = smov 0  }
   0x6 LB: > { %s877_s16 = sadd.s32 4294967295, %s828_s15   ;;  %s585_s17 = sadd.s32 4294967294, %s828_s15   ;;  %s828_s15 = sphi %s862_s15, %s1031_s15   ;;  %s824_s14 = sphi %s860_s14, %s1030_s14   ;;  %s820_s13 = sphi %s858_s13, %s1029_s13   ;;  %s816_s12 = sphi %s856_s12, %s1028_s12  }
   0x7   : > { %p40_p0 = scmp.ne.s32.totalorder %s820_s13, %s816_s12  ;;  %p41_p1 = scmp.eq.s32.totalorder %s877_s16, 0 }
   0x8   : > { %p106_p2 = scmp.eq.s32.totalorder %s877_s16, 7  ;;  %p112_p3 = scmp.eq.s32.totalorder %s585_s17, 7 }
   0x9   : > { %p886_p4 = por %p41_p1, %p40_p0  ;;  %p586_p5 = scmp.ge.s32.totalorder %s828_s15, 1 }
   0xa   : > { %p891_p6 = por %p112_p3, %p40_p0  ;;  %p119_p7 = scmp.lt.s32.totalorder %s828_s15, 9 }
   0xb   : > { %s130_s22 = sshll.u32 %s1020_s1, 4  ;;  %s830_s24 = smov [#allocation5]   ;;  %s131_s22 = int_to_ptr.hbm [resolvable:$true] %s130_s22 }
   0xc   : > { %p899_p8 = pnand %p586_p5, %p119_p7  ;;  %s132_s25 = sshll.u32 %s830_s24, 4  ;;  %s133_s25 = int_to_ptr.vmem [resolvable:$true] %s132_s25 }
   0xd   : > { %s908_s26 = sadd.s32 1, %s828_s15   ;;  %s831_s27 = smov 64  }
   0xe   : > { %p642_p9 = pneg %p899_p8  ;;  %s832_s28 = smov 4  }
   0xf   : > { %s24_s29 = ssub.s32 %s828_s15, %s908_s26  ;;  %s27_s30 = sadd.s32 1, %s824_s14 }
  0x10   : > { %p643_p10 = pnand %p642_p9, %p41_p1  ;;  %p25_p11 = scmp.eq.s32.totalorder %s24_s29, 0 }
  0x11   : > { %p34_p12 = scmp.ne.s32.totalorder %s824_s14, %s820_s13  ;;  %p35_p13 = scmp.eq.s32.totalorder %s828_s15, 0 }
  0x12   : > { %645 = dma.hbm_to_vmem [thread:$0]  (!%p643_p10), %s131_s22, 960, %s133_s25, [#allocation6], %s831_s27, %s831_s27, %s832_s28  }
  0x13   : > { %p655_p0 = scmp.lt.s32.totalorder %s828_s15, 8  ;;  %p36_p3 = por %p35_p13, %p34_p12 }
  0x14   : > { %s918_s4 = scalar_select %p25_p11, %s824_s14, %s27_s30  }
  0x15   : > { %p922_p5 = por %p106_p2, %p34_p12  ;;  %s149_s6 = sand.u32 1, %s824_s14  }
  0x16   : > { %s628_s7 = sshll.u32 %s828_s15, 4  ;;  %s589_s8 = sshll.u32 %s149_s6, 4 }
  0x17   : > { %s158_s11 = scalar_lea.hbm %s1019_s0, %s628_s7  ;;  %s153_s20 = scalar_lea.vmem [#allocation2], %s589_s8 }
  0x18   : > { %s159_s17 = sshll.u32 %s158_s11, 4  ;;  %s161_s21 = sshll.u32 %s153_s20, 4  ;;  %s160_s17 = int_to_ptr.hbm [resolvable:$true] %s159_s17  ;;  %s162_s21 = int_to_ptr.vmem [resolvable:$true] %s161_s21 }
  0x19   : > { %p933_p7 = pnand %p655_p0, %p36_p3  ;;  %s150_s24 = scalar_lea.sflag [#allocation3], %s149_s6 }
  0x1a   : > { %s728_s25 = sshra.s32 %s160_s17, 4  ;;  %s735_s30 = scalar_lea.hbm %s1019_s0, 128  ;;  %s729_s25 = int_to_ptr.hbm [resolvable:$true] %s728_s25 }
  0x1b   : > { %s730_s27 = scalar_lea.hbm %s729_s25, 16  ;;  %p732_p9 = pneg %p933_p7 }
  0x1c   : > { %p731_p2 = scmp.ne.s32.totalorder %s729_s25, %s730_s27  ;;  %p736_p12 = scmp.lt.s32.totalorder %s729_s25, %s1019_s0 }
  0x1d   : > { %p737_p13 = scmp.lt.s32.totalorder %s735_s30, %s730_s27 }
  0x1e   : > { %p733_p10 = pnand %p732_p9, %p731_p2 }
  0x1f   : > { %p738_p0 = por %p737_p13, %p736_p12 }
  0x20   : > { %p734_p11 = pneg %p733_p10 }
  0x22   : > { %p739_p3 = pnand %p738_p0, %p734_p11 }
  0x24   : > { %742 = shalt.err (!%p739_p3)
}
  0x25   : > { %s833_s6 = smov 128   ;;  %s834_s9 = smov 8  }
  0x26   : > { %649 = dma.hbm_to_vmem [thread:$0]  (!%p933_p7), %s160_s17, 256, %s162_s21, %s150_s24, %s833_s6, %s833_s6, %s834_s9  }
  0x27   : > { %173 = sbr.rel (%p899_p8) target bundleno = 260 (0x104), region = 32  ;;  %s950_s10 = sand.u32 (!%p899_p8), 1, %s820_s13  }
  0x28   : > { %s593_s11 = sshll.u32 (!%p899_p8), %s950_s10, 4  ;;  %s176_s20 = scalar_lea.sflag (!%p899_p8), [#allocation3], %s950_s10 }
  0x29   : > { %s954_s25 = scalar_lea.vmem (!%p899_p8), [#allocation2], %s593_s11 }
  0x2c   : > { %803 = dma.done.wait (%p886_p4), %s176_s20, 256  }
  0x2d   : > { %805 = vsyncadd (%p886_p4), %s176_s20, 4294967040 }
  0x2e   : > { %807 = dma.done.wait (%p41_p1), [#allocation6], 960  }
  0x2f   : > { %809 = vsyncadd (%p41_p1), [#allocation6], 4294966336  ;;  %vm232_vm0 = vcmask 1041408   ;;  %vm233_vm1 = vcmask 1042432   ;;  %v835_v0 = vmov 65535   ;;  %v630_v21 = vld [vmem:[#allocation5 + $0xc] sm:$0xff]  ;;  %s505_s22 = scalar_lea.hbm %s1022_s3, %s877_s16 }
  0x30   : > { %v234_v1 = vsel %vm232_vm0, 4294967295, %v835_v0  ;;  %v218_v2 = vld [vmem:[#allocation5 + $0x14] sm:$0x7]  ;;  %v212_v3 = vld [vmem:[#allocation5 + $0x8] sm:$0x7]  ;;  %v629_v22 = vld [vmem:[#allocation5] sm:$0xff] }
  0x31   : > { %v285_v4 = vld [vmem:[#allocation5 + $0x20] sm:$0x7]  ;;  %v224_v5 = vunpack.c.l.b16 %v218_v2  ;;  %v257_v6 = vunpack.c.l.b16 %v212_v3  ;;  %v320_v8 = vld [vmem:[#allocation5 + $0x2c] sm:$0x7]  ;;  %v235_v9 = vsel %vm233_vm1, %v234_v1, 0  ;;  %v631_v23 = vld [vmem:[#allocation5 + $0x18] sm:$0xff] }
  0x32   : > { %v291_v7 = vunpack.c.l.b16 %v285_v4  ;;  %v326_v10 = vunpack.c.l.b16 %v320_v8  ;;  %v355_v15 = vld [vmem:[#allocation5 + $0x38] sm:$0x7]  ;;  %v208_v25 = vld [vmem:[%s954_s25] sm:$0xff]  ;;  %vm228_vm2 = vcmask 171008   ;;  %s206_s24 = scalar_lea.vmem [#allocation7], %s950_s10  ;;  %s509_s28 = sshll.u32 %s505_s22, 4  ;;  %s510_s28 = int_to_ptr.hbm [resolvable:$true] %s509_s28 }
  0x33   : > { %v226_v11 = vpack.c.b16 %v224_v5, %v224_v5  ;;  %v259_v12 = vpack.c.b16 %v257_v6, %v257_v6  ;;  %v361_v19 = vunpack.c.l.b16 %v355_v15  ;;  %v213_v24 = vld [vmem:[%s954_s25 + $0x1] sm:$0xff]  ;;  %v209_v32 = vpack.c.bf16 %v208_v25, %v208_v25  ;;  %s507_s27 = sshll.u32 %s206_s24, 4  ;;  %s497_s29 = scalar_lea.sflag [#allocation4], %s950_s10  ;;  %s508_s27 = int_to_ptr.vmem [resolvable:$true] %s507_s27 }
  0x34   : > { %v293_v13 = vpack.c.b16 %v291_v7, %v291_v7  ;;  %v328_v14 = vpack.c.b16 %v326_v10, %v326_v10  ;;  %v632_v27 = vld [vmem:[#allocation5 + $0x24] sm:$0xff]  ;;  %v214_v31 = vpack.c.bf16 %v213_v24, %v213_v24  ;;  %v633_v35 = vld [vmem:[#allocation5 + $0x30] sm:$0xff]  ;;  %s772_s30 = sshra.s32 %s510_s28, 4  ;;  %s778_s6 = scalar_lea.hbm %s1022_s3, 8  ;;  %s773_s30 = int_to_ptr.hbm [resolvable:$true] %s772_s30 }
  0x35   : > { %v237_v16 = vand.u32 %v235_v9, %v226_v11  ;;  %v265_v17 = vand.u32 %v259_v12, %v235_v9  ;;  %v363_v26 = vpack.c.b16 %v361_v19, %v361_v19  ;;  %v280_v28 = vld [vmem:[%s954_s25 + $0x2] sm:$0xff]  ;;  %s774_s7 = scalar_lea.hbm %s773_s30, 1  ;;  %p779_p7 = scmp.lt.s32.totalorder %s773_s30, %s1022_s3 }
  0x36   : > { %v299_v18 = vand.u32 %v293_v13, %v235_v9  ;;  %v334_v20 = vand.u32 %v328_v14, %v235_v9  ;;  %v315_v29 = vld [vmem:[%s954_s25 + $0x3] sm:$0xff]  ;;  %v281_v33 = vpack.c.bf16 %v280_v28, %v280_v28  ;;  %p775_p1 = scmp.ne.s32.totalorder %s773_s30, %s774_s7  ;;  %p780_p2 = scmp.lt.s32.totalorder %s778_s6, %s774_s7 }
  0x37   : > { %245 = vmatpush.bf16.msra.mxu0 %v237_v16  ;;  %273 = vmatpush.bf16.msra.mxu1 %v265_v17  ;;  %v369_v30 = vand.u32 %v363_v26, %v235_v9  ;;  %v316_v34 = vpack.c.bf16 %v315_v29, %v315_v29  ;;  %v350_v36 = vld [vmem:[%s954_s25 + $0x4] sm:$0xff] }
  0x38   : > { %307 = vmatpush.bf16.msra.mxu2 %v299_v18  ;;  %342 = vmatpush.bf16.msra.mxu3 %v334_v20  ;;  %v391_v37 = vld [vmem:[%s954_s25 + $0x5] sm:$0xff]  ;;  %v351_v39 = vpack.c.bf16 %v350_v36, %v350_v36  ;;  %p776_p4 = pnand %p775_p1, %p922_p5  ;;  %p781_p9 = por %p780_p2, %p779_p7 }
  0x39   : > { %v422_v38 = vld [vmem:[%s954_s25 + $0x6] sm:$0xff]  ;;  %v392_v40 = vpack.c.bf16 %v391_v37, %v391_v37 }
  0x3a   : > { %v423_v41 = vpack.c.bf16 %v422_v38, %v422_v38  ;;  %v441_v42 = vld [vmem:[%s954_s25 + $0x7] sm:$0xff]  ;;  %p777_p8 = pneg %p776_p4 }
  0x3b   : > { %246 = vmatpush.bf16.msra.mxu0 %v630_v21  ;;  %274 = vmatpush.bf16.msra.mxu1 %v629_v22  ;;  %v460_v43 = vld [vmem:[%s954_s25 + $0x8] sm:$0xff]  ;;  %v442_v44 = vpack.c.bf16 %v441_v42, %v441_v42 }
  0x3c   : > { %308 = vmatpush.bf16.msra.mxu2 %v631_v23  ;;  %343 = vmatpush.bf16.msra.mxu3 %v632_v27  ;;  %v461_v45 = vpack.c.bf16 %v460_v43, %v460_v43  ;;  %p782_p10 = pnand %p781_p9, %p777_p8 }
  0x3e   : > { %599 = vmatmul.msk.bf16.vlgmr.msra.gmra.mxu0 %vm228_vm2, %v214_v31  ;;  %604 = vmatmul.msk.bf16.vlgmr.msra.gmra.mxu1 %vm228_vm2, %v209_v32 }
  0x3f   : > { %377 = vmatpush.bf16.msrb.mxu0 %v369_v30  ;;  %402 = vmatpush.bf16.msrb.mxu1 %v237_v16 }
  0x40   : > { %609 = vmatmul.msk.bf16.vlgmr.msra.gmra.mxu2 %vm228_vm2, %v281_v33  ;;  %614 = vmatmul.msk.bf16.vlgmr.msra.gmra.mxu3 %vm228_vm2, %v316_v34 }
  0x41   : > { %415 = vmatpush.bf16.msrb.mxu2 %v265_v17  ;;  %433 = vmatpush.bf16.msrb.mxu3 %v299_v18 }
  0x43   : > { %378 = vmatpush.bf16.msrb.mxu0 %v633_v35  ;;  %403 = vmatpush.bf16.msrb.mxu1 %v630_v21 }
  0x45   : > { %416 = vmatpush.bf16.msrb.mxu2 %v629_v22  ;;  %434 = vmatpush.bf16.msrb.mxu3 %v631_v23  ;;  %v486_v22 = vld [vmem:[%s1021_s2] sm:$0x1] }
  0x47   : > { %452 = vmatpush.bf16.msra.mxu0 %v334_v20  ;;  %471 = vmatpush.bf16.msra.mxu1 %v369_v30 }
  0x4b   : > { %453 = vmatpush.bf16.msra.mxu0 %v632_v27  ;;  %472 = vmatpush.bf16.msra.mxu1 %v633_v35 }
  0x4e   : > { %619 = vmatmul.msk.bf16.vlgmr.msrb.gmra.mxu0 %vm228_vm2, %v351_v39  ;;  %620 = vmatmul.msk.bf16.vlgmr.msrb.gmra.mxu1 %vm228_vm2, %v392_v40 }
  0x50   : > { %621 = vmatmul.msk.bf16.vlgmr.msrb.gmra.mxu2 %vm228_vm2, %v351_v39  ;;  %622 = vmatmul.msk.bf16.vlgmr.msrb.gmra.mxu3 %vm228_vm2, %v423_v41 }
  0x5e   : > { %623 = vmatmul.msk.bf16.vlgmr.msra.gmra.mxu0 %vm228_vm2, %v442_v44  ;;  %624 = vmatmul.msk.bf16.vlgmr.msra.gmra.mxu1 %vm228_vm2, %v461_v45 }
  0xbb   : > { %v248_v46 = vpop.f32.mrf.mxu0  ;;  %v276_v47 = vpop.f32.mrf.mxu1 }
  0xbc   : > { %v277_v52 = vadd.f32 %v276_v47, %v248_v46 }
  0xc3   : > { %v310_v48 = vpop.f32.mrf.mxu2  ;;  %v345_v49 = vpop.f32.mrf.mxu3 }
  0xc4   : > { %v250_v50 = vpop.f32.mrf.mxu0  ;;  %v278_v51 = vpop.f32.mrf.mxu1  ;;  %v314_v57 = vadd.f32 %v310_v48, %v277_v52 }
  0xc6   : > { %v349_v58 = vadd.f32 %v345_v49, %v314_v57 }
  0xcb   : > { %v312_v53 = vpop.f32.mrf.mxu2  ;;  %v347_v54 = vpop.f32.mrf.mxu3 }
  0xcc   : > { %v380_v55 = vpop.f32.mrf.mxu0  ;;  %v405_v56 = vpop.f32.mrf.mxu1 }
  0xcd   : > { %v384_v59 = vadd.f32 %v380_v55, %v349_v58 }
  0xcf   : > { %v385_v0 = vrot.slane %v384_v59, 4 }
  0xd1   : > { %v386_v2 = vmax.f32 %v384_v59, %v385_v0 }
  0xd3   : > { %v418_v60 = vpop.f32.mrf.mxu2  ;;  %v436_v61 = vpop.f32.mrf.mxu3  ;;  %v387_v9 = vrot.slane %v386_v2, 2 }
  0xd4   : > { %v382_v62 = vpop.f32.mrf.mxu0  ;;  %v407_v63 = vpop.f32.mrf.mxu1  ;;  %v419_v1 = vadd.f32 %v418_v60, %v405_v56 }
  0xd5   : > { %v388_v12 = vmax.f32 %v386_v2, %v387_v9 }
  0xd6   : > { %v440_v3 = vadd.f32 %v436_v61, %v419_v1 }
  0xd7   : > { %v389_v17 = vrot.slane %v388_v12, 1 }
  0xd9   : > { %v390_v20 = vmax.f32 %v388_v12, %v389_v17 }
  0xdb   : > { %v420_v4 = vpop.f32.mrf.mxu2  ;;  %v438_v5 = vpop.f32.mrf.mxu3 }
  0xdc   : > { %v455_v6 = vpop.f32.mrf.mxu0  ;;  %v474_v7 = vpop.f32.mrf.mxu1 }
  0xdd   : > { %v459_v8 = vadd.f32 %v455_v6, %v440_v3 }
  0xdf   : > { %v478_v10 = vadd.f32 %v474_v7, %v459_v8 }
  0xe1   : > { %v479_v11 = vrot.slane %v478_v10, 4 }
  0xe3   : > { %v480_v13 = vmax.f32 %v478_v10, %v479_v11 }
  0xe4   : > { %v457_v14 = vpop.f32.mrf.mxu0  ;;  %v476_v15 = vpop.f32.mrf.mxu1 }
  0xe5   : > { %v481_v16 = vrot.slane %v480_v13, 2 }
  0xe7   : > { %v482_v18 = vmax.f32 %v480_v13, %v481_v16 }
  0xe9   : > { %v483_v19 = vrot.slane %v482_v18, 1 }
  0xeb   : > { %v484_v21 = vmax.f32 %v482_v18, %v483_v19 }
  0xed   : > { %v485_v23 = vmax.f32 %v390_v20, %v484_v21 }
  0xef   : > { %v487_v24 = vadd.f32 %v486_v22, %v485_v23 }
  0xf1   : > { %v489_v25 = vmul.f32 1.442695, %v487_v24  ;;  %vm488_vm3 = vcmp.gt.f32.partialorder %v487_v24, 0.0 }
  0xf3   : > { %696 = vpow2.f32 %v489_v25 }
  0xf9   : > { %v697_v26 = vpop.eup %696 }
  0xfa   : > { %v625_v27 = vadd.f32 -1.0, %v697_v26 }
  0xfc   : > { %v492_v28 = vmul.f32 1.6732632, %v625_v27 }
  0xfe   : > { %v493_v29 = vsel %vm488_vm3, %v487_v24, %v492_v28 }
  0xff   : > { %v494_v30 = vmul.f32 1.050701, %v493_v29 }
 0x101   : > { %495 = vst [vmem:[%s206_s24] sm:$0x1] %v494_v30 }
 0x102   : > { %785 = shalt.err (!%p782_p10)
}
 0x103   : > { %640 = dma.vmem_to_hbm [thread:$0]  (%p922_p5), %s508_s27, 16, %s510_s28, %s497_s29  }
 0x104 PF: > { %p657_p11 = scmp.ge.s32.totalorder %s828_s15, 2  ;;  %s521_s10 = sand.u32 1, %s816_s12  }
 0x105   : > { %s522_s20 = scalar_lea.sflag [#allocation4], %s521_s10 }
 0x106   : > { %p651_p12 = pnand %p657_p11, %p891_p6 }
 0x108   : > { %p652_p13 = pneg %p651_p12 }
 0x10a   : > { %811 = dma.done.wait (%p652_p13), %s522_s20, 16  }
 0x10b   : > { %813 = vsyncadd (%p652_p13), %s522_s20, 4294967280  ;;  %p17_p0 = scmp.ge.s32.totalorder %s908_s26, 10   ;;  %s1028_s12 = smov %s820_s13 }
 0x10c   : > { %s1029_s13 = smov %s824_s14  ;;  %s1030_s14 = smov %s918_s4 }
 0x10d   : > { %s1031_s15 = smov %s908_s26  ;;  %19 = sbr.rel (!%p17_p0) target bundleno = 6 (0x6), region = 85 }
 0x112   :  { %527 = vsyncpa [#allocation3], 1 }
 0x113   :  { %529 = vsyncpa [#allocation3 + $0x1], 1 }
 0x114   :  { %530 = vsyncpa [#allocation6], 1 }
 0x115   :  { %531 = vsyncpa [#allocation4], 1 }
 0x116   :  { %533 = vsyncpa [#allocation4 + $0x1], 1 }

</bundles_post_ra>
